<compile_context>
chip_gen: v7x
topology: tpu7x:2x2x1
jax: 0.10.0
libtpu: 0.0.40
codegen_flags: <defaults>
</compile_context>

<pallas_src>
import jax
import jax.numpy as jnp
from jax import lax
from jax.experimental import pallas as pl
from jax.experimental.pallas import tpu as pltpu


def lstm_senti_kernel(maxlen_ref,      # SMEM (1,) int32   (scalar prefetch)
                      xp_ref,          # VMEM (T_CHUNK, B_TILE, 4H) pre-projected gates
                      len_ref,         # VMEM (B_TILE, 1) int32 valid lengths
                      whh_ref,         # VMEM (H, 4H) fused recurrent weights
                      wout_ref,        # VMEM (H, TGT)
                      bout_ref,        # VMEM (1, TGT)
                      out_ref,         # VMEM (B_TILE, TGT)
                      h_ref, c_ref):   # VMEM (B_TILE, H) f32 persistent LSTM state
    t_idx = pl.program_id(1)
    n_t = pl.num_programs(1)
    t_chunk, _, g4 = xp_ref.shape
    hdim = g4 // 4
    chunk_start = t_idx * t_chunk
    max_len = maxlen_ref[0]

    @pl.when(t_idx == 0)
    def _init():
        h_ref[...] = jnp.zeros_like(h_ref)
        c_ref[...] = jnp.zeros_like(c_ref)

    # Skip whole chunks that lie entirely past the longest sequence.
    @pl.when(chunk_start < max_len)
    def _chunk():
        lengths = len_ref[...]                      # (B_TILE, 1) int32
        w_hh = whh_ref[...]                         # (H, 4H) single MXU operand

        def step(t, carry):
            h, c = carry
            # One fused, lane-dense (B,H)@(H,4H) matmul per step.
            z = (xp_ref[t].astype(jnp.float32) +
                 jnp.dot(h.astype(w_hh.dtype), w_hh,
                         preferred_element_type=jnp.float32))      # (B, 4H)
            # Two full-width EUP passes, then static lane slices per gate
            # (gate order i, f, g, o along the 4H axis).
            sig = jax.nn.sigmoid(z)
            tnh = jnp.tanh(z)
            i_g = sig[:, 0 * hdim:1 * hdim]
            f_g = sig[:, 1 * hdim:2 * hdim]
            g_g = tnh[:, 2 * hdim:3 * hdim]
            o_g = sig[:, 3 * hdim:4 * hdim]

            c_new = f_g * c + i_g * g_g
            h_new = o_g * jnp.tanh(c_new)

            # pack_padded_sequence semantics: freeze state once t >= length[b].
            valid = (chunk_start + t) < lengths     # (B_TILE, 1)
            return (jnp.where(valid, h_new, h), jnp.where(valid, c_new, c))

        h0 = h_ref[...]
        c0 = c_ref[...]
        # Unroll only within the chunk (bounded code size / vreg pressure).
        h_last, c_last = lax.fori_loop(0, t_chunk, step, (h0, c0), unroll=True)
        h_ref[...] = h_last
        c_ref[...] = c_last

    @pl.when(t_idx == n_t - 1)
    def _finalize():
        out_ref[...] = (jnp.dot(h_ref[...].astype(wout_ref.dtype), wout_ref[...],
                                preferred_element_type=jnp.float32)
                        + bout_ref[...])


def senti_forward(sentences, lengths, params, *,
                  mxu_dtype=jnp.bfloat16, b_tile=8, t_chunk=4):
    """sentences: (B, T) int32 token ids, lengths: (B,) int32 valid lengths."""
    emb_table = params["embedding"]        # (V, E)
    w_ih = params["w_ih"]                  # (E, 4H)  gate order i, f, g, o
    w_hh = params["w_hh"]                  # (H, 4H)
    b = params["b"]                        # (1, 4H)  (= b_ih + b_hh)
    w_out = params["w_out"]                # (H, TGT)
    b_out = params["b_out"]                # (1, TGT)

    B, T = sentences.shape
    E = emb_table.shape[1]
    H = w_hh.shape[0]
    TGT = w_out.shape[1]

    t_chunk = min(t_chunk, T)
    T_pad = pl.cdiv(T, t_chunk) * t_chunk
    B_pad = pl.cdiv(B, b_tile) * b_tile

    # Glue (XLA side): time-major embedding gather, then one (T*B,E)@(E,4H)
    # matmul -> contiguous lane-dense (T, B, 4H) slab. No gate-major transpose.
    emb = emb_table[sentences.T].astype(jnp.float32)                 # (T, B, E)
    xproj = (emb.reshape(T * B, E) @ w_ih + b).reshape(T, B, 4 * H)  # (T, B, 4H)
    xproj = jnp.pad(xproj, ((0, T_pad - T), (0, B_pad - B), (0, 0)))
    xproj = xproj.astype(mxu_dtype)

    lengths_p = jnp.pad(lengths.astype(jnp.int32), (0, B_pad - B)).reshape(B_pad, 1)
    maxlen = jnp.max(lengths).astype(jnp.int32).reshape(1)           # scalar prefetch

    w_hh_c = w_hh.astype(mxu_dtype)
    w_out_c = w_out.astype(mxu_dtype)
    b_out_c = b_out.astype(jnp.float32)

    grid = (B_pad // b_tile, T_pad // t_chunk)     # (parallel batch, arbitrary time)

    # NOTE: at real sizes on v5e, raise vmem_limit_bytes (scoped default 16 MiB)
    # or shrink t_chunk; at toy sizes the defaults are fine.
    out = pl.pallas_call(
        lstm_senti_kernel,
        out_shape=jax.ShapeDtypeStruct((B_pad, TGT), jnp.float32),
        grid_spec=pltpu.PrefetchScalarGridSpec(
            num_scalar_prefetch=1,
            grid=grid,
            in_specs=[
                pl.BlockSpec((t_chunk, b_tile, 4 * H),
                             lambda bi, ti, ml: (ti, bi, 0)),        # streamed xproj chunk
                pl.BlockSpec((b_tile, 1), lambda bi, ti, ml: (bi, 0)),   # lengths
                pl.BlockSpec((H, 4 * H), lambda bi, ti, ml: (0, 0)),     # W_hh (resident)
                pl.BlockSpec((H, TGT), lambda bi, ti, ml: (0, 0)),       # W_out (resident)
                pl.BlockSpec((1, TGT), lambda bi, ti, ml: (0, 0)),       # b_out (resident)
            ],
            out_specs=pl.BlockSpec((b_tile, TGT), lambda bi, ti, ml: (bi, 0)),
            scratch_shapes=[pltpu.VMEM((b_tile, H), jnp.float32),    # h state
                            pltpu.VMEM((b_tile, H), jnp.float32)],   # c state
        ),
        compiler_params=pltpu.CompilerParams(
            dimension_semantics=("parallel", "arbitrary"),
        ),
    )(maxlen, xproj, lengths_p, w_hh_c, w_out_c, b_out_c)
    return out[:B]


def reference_forward(sentences, lengths, params):
    """Pure-JAX reference with identical semantics (for correctness check)."""
    emb = params["embedding"][sentences].astype(jnp.float32)   # (B, T, E)
    B, T, E = emb.shape
    H = params["w_hh"].shape[0]

    def step(carry, t):
        h, c = carry
        x_t = emb[:, t, :]
        gates = x_t @ params["w_ih"] + h @ params["w_hh"] + params["b"]
        i_g = jax.nn.sigmoid(gates[:, 0 * H:1 * H])
        f_g = jax.nn.sigmoid(gates[:, 1 * H:2 * H])
        g_g = jnp.tanh(gates[:, 2 * H:3 * H])
        o_g = jax.nn.sigmoid(gates[:, 3 * H:4 * H])
        c_new = f_g * c + i_g * g_g
        h_new = o_g * jnp.tanh(c_new)
        m = (t < lengths).astype(jnp.float32)[:, None]
        c = m * c_new + (1.0 - m) * c
        h = m * h_new + (1.0 - m) * h
        return (h, c), None

    h0 = jnp.zeros((B, H), jnp.float32)
    c0 = jnp.zeros((B, H), jnp.float32)
    (h, _), _ = jax.lax.scan(step, (h0, c0), jnp.arange(T))
    return h @ params["w_out"] + params["b_out"]


def init_params(key, vocab_size, embed_dim, hidden_dim, target_size):
    """Deterministic init mirroring PyTorch defaults (Embedding ~ N(0,1),
    LSTM/Linear ~ U(-1/sqrt(H), 1/sqrt(H)))."""
    ks = jax.random.split(key, 7)
    bound = 1.0 / jnp.sqrt(hidden_dim)
    emb = jax.random.normal(ks[0], (vocab_size, embed_dim), jnp.float32)
    w_ih = jax.random.uniform(ks[1], (embed_dim, 4 * hidden_dim), jnp.float32, -bound, bound)
    w_hh = jax.random.uniform(ks[2], (hidden_dim, 4 * hidden_dim), jnp.float32, -bound, bound)
    b_ih = jax.random.uniform(ks[3], (4 * hidden_dim,), jnp.float32, -bound, bound)
    b_hh = jax.random.uniform(ks[4], (4 * hidden_dim,), jnp.float32, -bound, bound)
    w_out = jax.random.uniform(ks[5], (hidden_dim, target_size), jnp.float32, -bound, bound)
    b_out = jax.random.uniform(ks[6], (target_size,), jnp.float32, -bound, bound)
    return {
        "embedding": emb,
        "w_ih": w_ih,
        "w_hh": w_hh,
        "b": (b_ih + b_hh)[None, :],
        "w_out": w_out,
        "b_out": b_out[None, :],
    }


if __name__ == "__main__":
    # Small synthetic config (gp.*): vocab=50, embed=16, hidden=32, target=2.
    VOCAB, EMBED, HIDDEN, TARGET = 50, 16, 32, 2
    B, T = 2, 8

    key = jax.random.PRNGKey(0)
    k_tok, k_par = jax.random.split(key)
    params = init_params(k_par, VOCAB, EMBED, HIDDEN, TARGET)

    sentences = jax.random.randint(k_tok, (B, T), 0, VOCAB, dtype=jnp.int32)

    # Case 1: exact f32 MXU path (one full-length + one padded sequence).
    lengths_a = jnp.array([T, 5], dtype=jnp.int32)
    ref_a = reference_forward(sentences, lengths_a, params)
    out_f32 = jax.block_until_ready(
        senti_forward(sentences, lengths_a, params, mxu_dtype=jnp.float32))
    assert out_f32.shape == (B, TARGET)
    assert jnp.allclose(out_f32, ref_a, atol=1e-4, rtol=1e-4), (out_f32, ref_a)

    # Case 2: all lengths end before the second T-chunk -> exercises the
    # max_len chunk-skip path (recurrence skipped, final write still emitted).
    lengths_b = jnp.array([4, 2], dtype=jnp.int32)
    ref_b = reference_forward(sentences, lengths_b, params)
    out_skip = jax.block_until_ready(
        senti_forward(sentences, lengths_b, params, mxu_dtype=jnp.float32))
    assert jnp.allclose(out_skip, ref_b, atol=1e-4, rtol=1e-4), (out_skip, ref_b)

    # Case 3: default bf16 MXU operands (f32 accumulation / state math).
    out_bf16 = jax.block_until_ready(senti_forward(sentences, lengths_a, params))
    assert jnp.allclose(out_bf16, ref_a, atol=5e-2, rtol=5e-2), (out_bf16, ref_a)

    print("KERNEL_OK")
</pallas_src>

<mosaic_0001>
module attributes {stable_mosaic.version = 11 : i64} {
  func.func @lstm_senti_kernel(%arg0: i32, %arg1: i32, %arg2: memref<1xi32, #tpu.memory_space<smem>>, %arg3: memref<4x8x128xf32, #tpu.memory_space<vmem>>, %arg4: memref<8x1xi32, #tpu.memory_space<vmem>>, %arg5: memref<32x128xf32, #tpu.memory_space<vmem>>, %arg6: memref<32x2xf32, #tpu.memory_space<vmem>>, %arg7: memref<1x2xf32, #tpu.memory_space<vmem>>, %arg8: memref<8x2xf32, #tpu.memory_space<vmem>>, %arg9: memref<8x32xf32, #tpu.memory_space<vmem>>, %arg10: memref<8x32xf32, #tpu.memory_space<vmem>>) attributes {dimension_semantics = [#tpu.dimension_semantics<parallel>, #tpu.dimension_semantics<arbitrary>], iteration_bounds = array<i64: 1, 2>, scalar_prefetch = 1 : i64, scratch_operands = 2 : i64, tpu.core_type = #tpu.core_type<tc>, window_params = [{transform_indices = @transform_0, window_bounds = array<i64: 4, 8, 128>}, {transform_indices = @transform_1, window_bounds = array<i64: 8, 1>}, {pipeline_mode = #tpu.pipeline_mode<synchronous>, transform_indices = @transform_2, window_bounds = array<i64: 32, 128>}, {pipeline_mode = #tpu.pipeline_mode<synchronous>, transform_indices = @transform_3, window_bounds = array<i64: 32, 2>}, {pipeline_mode = #tpu.pipeline_mode<synchronous>, transform_indices = @transform_4, window_bounds = array<i64: 1, 2>}, {transform_indices = @transform_5, window_bounds = array<i64: 8, 2>}]} {
    %c4_i32 = arith.constant 4 : i32
    %0 = arith.muli %arg1, %c4_i32 : i32
    %c0 = arith.constant 0 : index
    %1 = memref.load %arg2[%c0] : memref<1xi32, #tpu.memory_space<smem>>
    %c0_i32 = arith.constant 0 : i32
    %2 = arith.cmpi eq, %arg1, %c0_i32 : i32
    %3 = arith.extui %2 : i1 to i32
    %c0_i32_0 = arith.constant 0 : i32
    %4 = arith.cmpi ne, %3, %c0_i32_0 : i32
    scf.if %4 {
      %cst = arith.constant 0.000000e+00 : f32
      %11 = vector.broadcast %cst : f32 to vector<8x32xf32>
      %c0_3 = arith.constant 0 : index
      %c0_4 = arith.constant 0 : index
      %12 = vector.load %arg9[%c0_3, %c0_4] : memref<8x32xf32, #tpu.memory_space<vmem>>, vector<8x32xf32>
      tpu.vector_store %arg9[%c0_3, %c0_4], %11 {strides = array<i32>} : memref<8x32xf32, #tpu.memory_space<vmem>>, vector<8x32xf32>,
      %cst_5 = arith.constant 0.000000e+00 : f32
      %13 = vector.broadcast %cst_5 : f32 to vector<8x32xf32>
      %c0_6 = arith.constant 0 : index
      %c0_7 = arith.constant 0 : index
      %14 = vector.load %arg10[%c0_6, %c0_7] : memref<8x32xf32, #tpu.memory_space<vmem>>, vector<8x32xf32>
      tpu.vector_store %arg10[%c0_6, %c0_7], %13 {strides = array<i32>} : memref<8x32xf32, #tpu.memory_space<vmem>>, vector<8x32xf32>,
    } else {
    }
    %5 = arith.cmpi slt, %0, %1 : i32
    %6 = arith.extui %5 : i1 to i32
    %c0_i32_1 = arith.constant 0 : i32
    %7 = arith.cmpi ne, %6, %c0_i32_1 : i32
    scf.if %7 {
      %c0_3 = arith.constant 0 : index
      %c0_4 = arith.constant 0 : index
      %11 = vector.load %arg4[%c0_3, %c0_4] : memref<8x1xi32, #tpu.memory_space<vmem>>, vector<8x1xi32>
      %c0_5 = arith.constant 0 : index
      %c0_6 = arith.constant 0 : index
      %12 = vector.load %arg5[%c0_5, %c0_6] : memref<32x128xf32, #tpu.memory_space<vmem>>, vector<32x128xf32>
      %c0_7 = arith.constant 0 : index
      %c0_8 = arith.constant 0 : index
      %13 = vector.load %arg9[%c0_7, %c0_8] : memref<8x32xf32, #tpu.memory_space<vmem>>, vector<8x32xf32>
      %c0_9 = arith.constant 0 : index
      %c0_10 = arith.constant 0 : index
      %14 = vector.load %arg10[%c0_9, %c0_10] : memref<8x32xf32, #tpu.memory_space<vmem>>, vector<8x32xf32>
      %c0_i32_11 = arith.constant 0 : i32
      %15 = arith.index_cast %c0_i32_11 : i32 to index
      %c0_12 = arith.constant 0 : index
      %c0_13 = arith.constant 0 : index
      %16 = vector.load %arg3[%15, %c0_12, %c0_13] : memref<4x8x128xf32, #tpu.memory_space<vmem>>, vector<1x8x128xf32>
      %17 = vector.shape_cast %16 : vector<1x8x128xf32> to vector<8x128xf32>
      %cst = arith.constant dense<0.000000e+00> : vector<8x128xf32>
      %18 = tpu.matmul %13, %12, %cst {dimension_numbers = #tpu.dot_dimension_numbers<[1], [0], [0], [1], [0, 0, 1, 1], [], []>} : vector<8x32xf32>, vector<32x128xf32>, vector<8x128xf32> -> vector<8x128xf32>
      %19 = arith.addf %17, %18 : vector<8x128xf32>
      %20 = arith.negf %19 : vector<8x128xf32>
      %21 = math.exp %20 : vector<8x128xf32>
      %cst_14 = arith.constant 1.000000e+00 : f32
      %22 = vector.broadcast %cst_14 : f32 to vector<8x128xf32>
      %23 = arith.addf %22, %21 : vector<8x128xf32>
      %24 = arith.divf %22, %23 : vector<8x128xf32>
      %25 = math.tanh %19 : vector<8x128xf32>
      %26 = vector.extract_strided_slice %24 {offsets = [0, 0], sizes = [8, 32], strides = [1, 1]} : vector<8x128xf32> to vector<8x32xf32>
      %27 = vector.extract_strided_slice %24 {offsets = [0, 32], sizes = [8, 32], strides = [1, 1]} : vector<8x128xf32> to vector<8x32xf32>
      %28 = vector.extract_strided_slice %25 {offsets = [0, 64], sizes = [8, 32], strides = [1, 1]} : vector<8x128xf32> to vector<8x32xf32>
      %29 = vector.extract_strided_slice %24 {offsets = [0, 96], sizes = [8, 32], strides = [1, 1]} : vector<8x128xf32> to vector<8x32xf32>
      %30 = arith.mulf %27, %14 : vector<8x32xf32>
      %31 = arith.mulf %26, %28 : vector<8x32xf32>
      %32 = arith.addf %30, %31 : vector<8x32xf32>
      %33 = math.tanh %32 : vector<8x32xf32>
      %34 = arith.mulf %29, %33 : vector<8x32xf32>
      %35 = arith.addi %0, %c0_i32_11 : i32
      %36 = vector.broadcast %35 : i32 to vector<8x1xi32>
      %37 = arith.cmpi slt, %36, %11 : vector<8x1xi32>
      %38 = vector.shape_cast %37 : vector<8x1xi1> to vector<8x1xi1>
      %39 = vector.broadcast %38 : vector<8x1xi1> to vector<8x32xi1>
      %40 = arith.select %39, %34, %13 : vector<8x32xi1>, vector<8x32xf32>
      %41 = vector.shape_cast %37 : vector<8x1xi1> to vector<8x1xi1>
      %42 = vector.broadcast %41 : vector<8x1xi1> to vector<8x32xi1>
      %43 = arith.select %42, %32, %14 : vector<8x32xi1>, vector<8x32xf32>
      %c1_i32_15 = arith.constant 1 : i32
      %44 = arith.index_cast %c1_i32_15 : i32 to index
      %c0_16 = arith.constant 0 : index
      %c0_17 = arith.constant 0 : index
      %45 = vector.load %arg3[%44, %c0_16, %c0_17] : memref<4x8x128xf32, #tpu.memory_space<vmem>>, vector<1x8x128xf32>
      %46 = vector.shape_cast %45 : vector<1x8x128xf32> to vector<8x128xf32>
      %cst_18 = arith.constant dense<0.000000e+00> : vector<8x128xf32>
      %47 = tpu.matmul %40, %12, %cst_18 {dimension_numbers = #tpu.dot_dimension_numbers<[1], [0], [0], [1], [0, 0, 1, 1], [], []>} : vector<8x32xf32>, vector<32x128xf32>, vector<8x128xf32> -> vector<8x128xf32>
      %48 = arith.addf %46, %47 : vector<8x128xf32>
      %49 = arith.negf %48 : vector<8x128xf32>
      %50 = math.exp %49 : vector<8x128xf32>
      %cst_19 = arith.constant 1.000000e+00 : f32
      %51 = vector.broadcast %cst_19 : f32 to vector<8x128xf32>
      %52 = arith.addf %51, %50 : vector<8x128xf32>
      %53 = arith.divf %51, %52 : vector<8x128xf32>
      %54 = math.tanh %48 : vector<8x128xf32>
      %55 = vector.extract_strided_slice %53 {offsets = [0, 0], sizes = [8, 32], strides = [1, 1]} : vector<8x128xf32> to vector<8x32xf32>
      %56 = vector.extract_strided_slice %53 {offsets = [0, 32], sizes = [8, 32], strides = [1, 1]} : vector<8x128xf32> to vector<8x32xf32>
      %57 = vector.extract_strided_slice %54 {offsets = [0, 64], sizes = [8, 32], strides = [1, 1]} : vector<8x128xf32> to vector<8x32xf32>
      %58 = vector.extract_strided_slice %53 {offsets = [0, 96], sizes = [8, 32], strides = [1, 1]} : vector<8x128xf32> to vector<8x32xf32>
      %59 = arith.mulf %56, %43 : vector<8x32xf32>
      %60 = arith.mulf %55, %57 : vector<8x32xf32>
      %61 = arith.addf %59, %60 : vector<8x32xf32>
      %62 = math.tanh %61 : vector<8x32xf32>
      %63 = arith.mulf %58, %62 : vector<8x32xf32>
      %64 = arith.addi %0, %c1_i32_15 : i32
      %65 = vector.broadcast %64 : i32 to vector<8x1xi32>
      %66 = arith.cmpi slt, %65, %11 : vector<8x1xi32>
      %67 = vector.shape_cast %66 : vector<8x1xi1> to vector<8x1xi1>
      %68 = vector.broadcast %67 : vector<8x1xi1> to vector<8x32xi1>
      %69 = arith.select %68, %63, %40 : vector<8x32xi1>, vector<8x32xf32>
      %70 = vector.shape_cast %66 : vector<8x1xi1> to vector<8x1xi1>
      %71 = vector.broadcast %70 : vector<8x1xi1> to vector<8x32xi1>
      %72 = arith.select %71, %61, %43 : vector<8x32xi1>, vector<8x32xf32>
      %c2_i32 = arith.constant 2 : i32
      %73 = arith.index_cast %c2_i32 : i32 to index
      %c0_20 = arith.constant 0 : index
      %c0_21 = arith.constant 0 : index
      %74 = vector.load %arg3[%73, %c0_20, %c0_21] : memref<4x8x128xf32, #tpu.memory_space<vmem>>, vector<1x8x128xf32>
      %75 = vector.shape_cast %74 : vector<1x8x128xf32> to vector<8x128xf32>
      %cst_22 = arith.constant dense<0.000000e+00> : vector<8x128xf32>
      %76 = tpu.matmul %69, %12, %cst_22 {dimension_numbers = #tpu.dot_dimension_numbers<[1], [0], [0], [1], [0, 0, 1, 1], [], []>} : vector<8x32xf32>, vector<32x128xf32>, vector<8x128xf32> -> vector<8x128xf32>
      %77 = arith.addf %75, %76 : vector<8x128xf32>
      %78 = arith.negf %77 : vector<8x128xf32>
      %79 = math.exp %78 : vector<8x128xf32>
      %cst_23 = arith.constant 1.000000e+00 : f32
      %80 = vector.broadcast %cst_23 : f32 to vector<8x128xf32>
      %81 = arith.addf %80, %79 : vector<8x128xf32>
      %82 = arith.divf %80, %81 : vector<8x128xf32>
      %83 = math.tanh %77 : vector<8x128xf32>
      %84 = vector.extract_strided_slice %82 {offsets = [0, 0], sizes = [8, 32], strides = [1, 1]} : vector<8x128xf32> to vector<8x32xf32>
      %85 = vector.extract_strided_slice %82 {offsets = [0, 32], sizes = [8, 32], strides = [1, 1]} : vector<8x128xf32> to vector<8x32xf32>
      %86 = vector.extract_strided_slice %83 {offsets = [0, 64], sizes = [8, 32], strides = [1, 1]} : vector<8x128xf32> to vector<8x32xf32>
      %87 = vector.extract_strided_slice %82 {offsets = [0, 96], sizes = [8, 32], strides = [1, 1]} : vector<8x128xf32> to vector<8x32xf32>
      %88 = arith.mulf %85, %72 : vector<8x32xf32>
      %89 = arith.mulf %84, %86 : vector<8x32xf32>
      %90 = arith.addf %88, %89 : vector<8x32xf32>
      %91 = math.tanh %90 : vector<8x32xf32>
      %92 = arith.mulf %87, %91 : vector<8x32xf32>
      %93 = arith.addi %0, %c2_i32 : i32
      %94 = vector.broadcast %93 : i32 to vector<8x1xi32>
      %95 = arith.cmpi slt, %94, %11 : vector<8x1xi32>
      %96 = vector.shape_cast %95 : vector<8x1xi1> to vector<8x1xi1>
      %97 = vector.broadcast %96 : vector<8x1xi1> to vector<8x32xi1>
      %98 = arith.select %97, %92, %69 : vector<8x32xi1>, vector<8x32xf32>
      %99 = vector.shape_cast %95 : vector<8x1xi1> to vector<8x1xi1>
      %100 = vector.broadcast %99 : vector<8x1xi1> to vector<8x32xi1>
      %101 = arith.select %100, %90, %72 : vector<8x32xi1>, vector<8x32xf32>
      %c3_i32 = arith.constant 3 : i32
      %102 = arith.index_cast %c3_i32 : i32 to index
      %c0_24 = arith.constant 0 : index
      %c0_25 = arith.constant 0 : index
      %103 = vector.load %arg3[%102, %c0_24, %c0_25] : memref<4x8x128xf32, #tpu.memory_space<vmem>>, vector<1x8x128xf32>
      %104 = vector.shape_cast %103 : vector<1x8x128xf32> to vector<8x128xf32>
      %cst_26 = arith.constant dense<0.000000e+00> : vector<8x128xf32>
      %105 = tpu.matmul %98, %12, %cst_26 {dimension_numbers = #tpu.dot_dimension_numbers<[1], [0], [0], [1], [0, 0, 1, 1], [], []>} : vector<8x32xf32>, vector<32x128xf32>, vector<8x128xf32> -> vector<8x128xf32>
      %106 = arith.addf %104, %105 : vector<8x128xf32>
      %107 = arith.negf %106 : vector<8x128xf32>
      %108 = math.exp %107 : vector<8x128xf32>
      %cst_27 = arith.constant 1.000000e+00 : f32
      %109 = vector.broadcast %cst_27 : f32 to vector<8x128xf32>
      %110 = arith.addf %109, %108 : vector<8x128xf32>
      %111 = arith.divf %109, %110 : vector<8x128xf32>
      %112 = math.tanh %106 : vector<8x128xf32>
      %113 = vector.extract_strided_slice %111 {offsets = [0, 0], sizes = [8, 32], strides = [1, 1]} : vector<8x128xf32> to vector<8x32xf32>
      %114 = vector.extract_strided_slice %111 {offsets = [0, 32], sizes = [8, 32], strides = [1, 1]} : vector<8x128xf32> to vector<8x32xf32>
      %115 = vector.extract_strided_slice %112 {offsets = [0, 64], sizes = [8, 32], strides = [1, 1]} : vector<8x128xf32> to vector<8x32xf32>
      %116 = vector.extract_strided_slice %111 {offsets = [0, 96], sizes = [8, 32], strides = [1, 1]} : vector<8x128xf32> to vector<8x32xf32>
      %117 = arith.mulf %114, %101 : vector<8x32xf32>
      %118 = arith.mulf %113, %115 : vector<8x32xf32>
      %119 = arith.addf %117, %118 : vector<8x32xf32>
      %120 = math.tanh %119 : vector<8x32xf32>
      %121 = arith.mulf %116, %120 : vector<8x32xf32>
      %122 = arith.addi %0, %c3_i32 : i32
      %123 = vector.broadcast %122 : i32 to vector<8x1xi32>
      %124 = arith.cmpi slt, %123, %11 : vector<8x1xi32>
      %125 = vector.shape_cast %124 : vector<8x1xi1> to vector<8x1xi1>
      %126 = vector.broadcast %125 : vector<8x1xi1> to vector<8x32xi1>
      %127 = arith.select %126, %121, %98 : vector<8x32xi1>, vector<8x32xf32>
      %128 = vector.shape_cast %124 : vector<8x1xi1> to vector<8x1xi1>
      %129 = vector.broadcast %128 : vector<8x1xi1> to vector<8x32xi1>
      %130 = arith.select %129, %119, %101 : vector<8x32xi1>, vector<8x32xf32>
      %c4_i32_28 = arith.constant 4 : i32
      %c0_29 = arith.constant 0 : index
      %c0_30 = arith.constant 0 : index
      %131 = vector.load %arg9[%c0_29, %c0_30] : memref<8x32xf32, #tpu.memory_space<vmem>>, vector<8x32xf32>
      tpu.vector_store %arg9[%c0_29, %c0_30], %127 {strides = array<i32>} : memref<8x32xf32, #tpu.memory_space<vmem>>, vector<8x32xf32>,
      %c0_31 = arith.constant 0 : index
      %c0_32 = arith.constant 0 : index
      %132 = vector.load %arg10[%c0_31, %c0_32] : memref<8x32xf32, #tpu.memory_space<vmem>>, vector<8x32xf32>
      tpu.vector_store %arg10[%c0_31, %c0_32], %130 {strides = array<i32>} : memref<8x32xf32, #tpu.memory_space<vmem>>, vector<8x32xf32>,
    } else {
    }
    %c1_i32 = arith.constant 1 : i32
    %8 = arith.cmpi eq, %arg1, %c1_i32 : i32
    %9 = arith.extui %8 : i1 to i32
    %c0_i32_2 = arith.constant 0 : i32
    %10 = arith.cmpi ne, %9, %c0_i32_2 : i32
    scf.if %10 {
      %c0_3 = arith.constant 0 : index
      %c0_4 = arith.constant 0 : index
      %11 = vector.load %arg9[%c0_3, %c0_4] : memref<8x32xf32, #tpu.memory_space<vmem>>, vector<8x32xf32>
      %c0_5 = arith.constant 0 : index
      %c0_6 = arith.constant 0 : index
      %12 = vector.load %arg6[%c0_5, %c0_6] : memref<32x2xf32, #tpu.memory_space<vmem>>, vector<32x2xf32>
      %cst = arith.constant dense<0.000000e+00> : vector<8x2xf32>
      %13 = tpu.matmul %11, %12, %cst {dimension_numbers = #tpu.dot_dimension_numbers<[1], [0], [0], [1], [0, 0, 1, 1], [], []>} : vector<8x32xf32>, vector<32x2xf32>, vector<8x2xf32> -> vector<8x2xf32>
      %c0_7 = arith.constant 0 : index
      %c0_8 = arith.constant 0 : index
      %14 = vector.load %arg7[%c0_7, %c0_8] : memref<1x2xf32, #tpu.memory_space<vmem>>, vector<1x2xf32>
      %15 = vector.broadcast %14 : vector<1x2xf32> to vector<8x2xf32>
      %16 = arith.addf %13, %15 : vector<8x2xf32>
      %c0_9 = arith.constant 0 : index
      %c0_10 = arith.constant 0 : index
      %17 = vector.load %arg8[%c0_9, %c0_10] : memref<8x2xf32, #tpu.memory_space<vmem>>, vector<8x2xf32>
      tpu.vector_store %arg8[%c0_9, %c0_10], %16 {strides = array<i32>} : memref<8x2xf32, #tpu.memory_space<vmem>>, vector<8x2xf32>,
    } else {
    }
    return
  }
  func.func @transform_0(%arg0: i32, %arg1: i32, %arg2: memref<1xi32, #tpu.memory_space<smem>>) -> (i32, i32, i32) {
    %c0_i32 = arith.constant 0 : i32
    %c0_i32_0 = arith.constant 0 : i32
    return %arg1, %arg0, %c0_i32 : i32, i32, i32
  }
  func.func @transform_1(%arg0: i32, %arg1: i32, %arg2: memref<1xi32, #tpu.memory_space<smem>>) -> (i32, i32) {
    %c0_i32 = arith.constant 0 : i32
    %c0_i32_0 = arith.constant 0 : i32
    return %arg0, %c0_i32 : i32, i32
  }
  func.func @transform_2(%arg0: i32, %arg1: i32, %arg2: memref<1xi32, #tpu.memory_space<smem>>) -> (i32, i32) {
    %c0_i32 = arith.constant 0 : i32
    %c0_i32_0 = arith.constant 0 : i32
    %c0_i32_1 = arith.constant 0 : i32
    return %c0_i32, %c0_i32_0 : i32, i32
  }
  func.func @transform_3(%arg0: i32, %arg1: i32, %arg2: memref<1xi32, #tpu.memory_space<smem>>) -> (i32, i32) {
    %c0_i32 = arith.constant 0 : i32
    %c0_i32_0 = arith.constant 0 : i32
    %c0_i32_1 = arith.constant 0 : i32
    return %c0_i32, %c0_i32_0 : i32, i32
  }
  func.func @transform_4(%arg0: i32, %arg1: i32, %arg2: memref<1xi32, #tpu.memory_space<smem>>) -> (i32, i32) {
    %c0_i32 = arith.constant 0 : i32
    %c0_i32_0 = arith.constant 0 : i32
    %c0_i32_1 = arith.constant 0 : i32
    return %c0_i32, %c0_i32_0 : i32, i32
  }
  func.func @transform_5(%arg0: i32, %arg1: i32, %arg2: memref<1xi32, #tpu.memory_space<smem>>) -> (i32, i32) {
    %c0_i32 = arith.constant 0 : i32
    %c0_i32_0 = arith.constant 0 : i32
    return %arg0, %c0_i32 : i32, i32
  }
}

</mosaic_0001>

<bundles_post_ra>
// kernel: tpu_custom_call.1
= control target key start
LH: loop header
LB: loop body
LE: loop exit
PB: predicated region body
PF: predicated region fallthrough
CT: control target
= control target key end

     0   :  { %s1554_s0 = inlined_call_operand.<no memory space> [shape: s32[1], index: 0, kind: input, shape index: {}]   ;;  %s1555_s1 = inlined_call_operand.hbm [shape: f32[8,8,128], index: 1, kind: input, shape index: {}]   ;;  %s1556_s2 = inlined_call_operand.vmem [shape: s32[8,1], index: 2, kind: input, shape index: {}]   ;;  %s1557_s3 = inlined_call_operand.vmem [shape: f32[32,128], index: 3, kind: input, shape index: {}]   ;;  %s1558_s4 = inlined_call_operand.vmem [shape: f32[32,2], index: 4, kind: input, shape index: {}]   ;;  %s1559_s5 = inlined_call_operand.vmem [shape: f32[1,2], index: 5, kind: input, shape index: {}]   ;;  %s1560_s6 = inlined_call_operand.vmem [shape: f32[8,2], index: 6, kind: output, shape index: {}]  }
   0x1   :  { %11 = sst [smem:[#allocation5]] %s1554_s0 }
   0x2   :  { %12 = vsyncpa [#allocation7], 0 }
   0x3   :  { %14 = vsyncpa [#allocation7 + $0x1], 0  ;;  %s1315_s23 = smov 0   ;;  %s1317_s24 = smov 0  }
   0x4   :  { %s1319_s25 = smov 0   ;;  %s1321_s26 = smov 0  }
   0x5   :  { %s1323_s27 = smov 0   ;;  %s1325_s28 = smov 0  }
   0x6 LB: > { %s939_s0 = sadd.s32 4294967295, %s1261_s28   ;;  %s29_s29 = sadd.s32 1, %s1257_s27  ;;  %s1261_s28 = sphi %s1325_s28, %s20_s28   ;;  %s1257_s27 = sphi %s1323_s27, %s1568_s27   ;;  %s1253_s26 = sphi %s1321_s26, %s1567_s26   ;;  %s1249_s25 = sphi %s1319_s25, %s1566_s25   ;;  %s1245_s24 = sphi %s1317_s24, %s1565_s24   ;;  %s1241_s23 = sphi %s1315_s23, %s1564_s23  }
   0x7   : > { %p30_p0 = scmp.ge.s32.totalorder %s29_s29, 2  ;;  %s41_s30 = sadd.s32 1, %s1249_s25 }
   0x8   : > { %p48_p1 = scmp.ne.s32.totalorder %s1249_s25, %s1245_s24  ;;  %p49_p2 = scmp.eq.s32.totalorder %s1261_s28, 0 }
   0x9   : > { %s1570_s29 = smov (%p30_p0, %s29_s29), 0  ;;  %p54_p4 = scmp.ne.s32.totalorder %s1245_s24, %s1241_s23 }
   0xa   : > { %p1351_p3 = por %p49_p2, %p48_p1  ;;  %s36_s8 = ssub.s32 %s1257_s27, %s1570_s29 }
   0xb   : > { %p55_p5 = scmp.eq.s32.totalorder %s939_s0, 0  ;;  %p39_p6 = scmp.eq.s32.totalorder %s36_s8, 0 }
   0xc   : > { %p1085_p8 = scmp.lt.s32.totalorder %s1261_s28, 2  ;;  %s209_s11 = sand.u32 1, %s1249_s25  }
   0xd   : > { %p1358_p7 = por %p55_p5, %p54_p4  ;;  %s968_s12 = sshll.u32 %s1257_s27, 9 }
   0xe   : > { %s1364_s10 = scalar_select %p39_p6, %s1249_s25, %s41_s30  }
   0xf   : > { %s943_s13 = sshll.u32 %s209_s11, 5  ;;  %s1371_s16 = scalar_lea.hbm %s1555_s1, %s968_s12 }
  0x10   : > { %s213_s17 = scalar_lea.vmem [#allocation6], %s943_s13  ;;  %p1375_p9 = pnand %p1085_p8, %p1351_p3 }
  0x11   : > { %s221_s18 = sshll.u32 %s213_s17, 4  ;;  %s1381_s20 = scalar_lea.sflag [#allocation7], %s209_s11  ;;  %s1379_s18 = int_to_ptr.vmem [resolvable:$true] %s221_s18 }
  0x12   : > { %s1181_s21 = scalar_lea.hbm %s1371_s16, 512  ;;  %p1183_p11 = pneg %p1375_p9 }
  0x13   : > { %p1182_p10 = scmp.ne.s32.totalorder %s1371_s16, %s1181_s21  ;;  %s1186_s0 = scalar_lea.hbm %s1555_s1, 1024 }
  0x14   : > { %p1187_p0 = scmp.lt.u32.totalorder %s1371_s16, %s1555_s1  ;;  %p1188_p1 = scmp.lt.u32.totalorder %s1186_s0, %s1181_s21 }
  0x15   : > { %p1184_p12 = pnand %p1183_p11, %p1182_p10  ;;  %p1190_p3 = scmp.lt.u32.totalorder %s1181_s21, %s1371_s16 }
  0x16   : > { %p1189_p2 = por %p1188_p1, %p1187_p0 }
  0x17   : > { %p1185_p13 = pneg %p1184_p12 }
  0x18   : > { %p1191_p4 = por %p1190_p3, %p1189_p2 }
  0x1a   : > { %p1192_p5 = pnand %p1191_p4, %p1185_p13 }
  0x1c   : > { %1195 = shalt.err (!%p1192_p5)
}
  0x1d   : > { %s1196_s8 = scalar_lea.vmem %s1379_s18, 512  ;;  %s1263_s11 = smov [#allocation6]  }
  0x1e   : > { %p1197_p6 = scmp.ne.s32.totalorder %s1379_s18, %s1196_s8  ;;  %s1201_s12 = sshll.u32 %s1263_s11, 4  ;;  %s1202_s12 = int_to_ptr.vmem [resolvable:$false] %s1201_s12 }
  0x1f   : > { %s1203_s13 = scalar_lea.vmem %s1202_s12, 1024  ;;  %p1204_p12 = scmp.lt.s32.totalorder %s1379_s18, %s1202_s12 }
  0x20   : > { %p1199_p8 = pnand %p1197_p6, %p1183_p11  ;;  %p1205_p0 = scmp.lt.s32.totalorder %s1203_s13, %s1196_s8 }
  0x22   : > { %p1200_p10 = pneg %p1199_p8  ;;  %p1206_p1 = por %p1205_p0, %p1204_p12 }
  0x24   : > { %p1207_p2 = pnand %p1206_p1, %p1200_p10 }
  0x26   : > { %1210 = shalt.err (!%p1207_p2)
}
  0x27   : > { %s1264_s14 = smov 128   ;;  %s1265_s15 = smov 8  }
  0x28   : > { %1084 = dma.hbm_to_vmem [thread:$0]  (!%p1375_p9), %s1371_s16, 512, %s1379_s18, %s1381_s20, %s1264_s14, %s1264_s14, %s1265_s15  }
  0x29   : > { %p946_p11 = scmp.ge.s32.totalorder %s1261_s28, 1  ;;  %p229_p13 = scmp.lt.s32.totalorder %s1261_s28, 3 }
  0x2b   : > { %p230_p3 = pnand %p946_p11, %p229_p13 }
  0x2c   : > { %s235_s17 = sand.u32 (!%p230_p3), 1, %s1245_s24  }
  0x2d   : > { %233 = sbr.rel (%p230_p3) target bundleno = 3113 (0xc29), region = 40  ;;  %s947_s21 = sshll.u32 (!%p230_p3), %s235_s17, 5 }
  0x2e   : > { %s236_s22 = scalar_lea.sflag (!%p230_p3), [#allocation7], %s235_s17  ;;  %s1412_s23 = scalar_lea.vmem (!%p230_p3), [#allocation6], %s947_s21 }
  0x34   : > { %1236 = dma.done.wait (%p1358_p7), %s236_s22, 512  }
  0x35   : > { %1238 = vsyncadd (%p1358_p7), %s236_s22, 4294966784  ;;  %s1419_s0 = sshll.u32 %s1253_s26, 2  ;;  %s279_s16 = sld [smem:[#allocation5]] }
  0x36   : > { %p949_p9 = scmp.ne.s32.totalorder %s1253_s26, 0 }
  0x37   : > { %vm284_vm0 = vcmask (!%p949_p9), 261120   ;;  %v1266_v0 = vmov (!%p949_p9), 0.0  }
  0x38   : > { %283 = sbr.rel (%p949_p9) target bundleno = 63 (0x3f), region = 48  ;;  %285 = vst.msk [vmem:[#allocation2] sm:$0xff] (!%p949_p9), %vm284_vm0, %v1266_v0  ;;  %286 = vst.msk [vmem:[#allocation3] sm:$0xff] (!%p949_p9), %vm284_vm0, %v1266_v0 }
  0x3f PF: > { %p950_p4 = scmp.ge.s32.totalorder %s1419_s0, %s279_s16 }
  0x40   : > { %v292_v1 = vld [vmem:[%s1557_s3] sm:$0xff] (!%p950_p4)  ;;  %v293_v2 = vld [vmem:[%s1557_s3 + $0x8] sm:$0xff] (!%p950_p4)  ;;  %v294_v3 = vld [vmem:[%s1557_s3 + $0x10] sm:$0xff] (!%p950_p4)  ;;  %v1267_v4 = vmov (!%p950_p4), 0.0|0.0   ;;  %vm1268_vm1 = vmmov (!%p950_p4), 0   ;;  %v1269_v7 = vmov (!%p950_p4), 0.0   ;;  %v402_v21 = vstv (!%p950_p4), %s1419_s0 }
  0x41   : > { %290 = sbr.rel (%p950_p4) target bundleno = 2887 (0xb47), region = 52  ;;  %1049 = vmatprep.subr.bf16.mxu0 (!%p950_p4), %v1267_v4  ;;  %v1433_v5 = vpack.c.bf16 (!%p950_p4), %v293_v2, %v292_v1  ;;  %v295_v6 = vld [vmem:[%s1557_s3 + $0x18] sm:$0xff] (!%p950_p4)  ;;  %1002 = vmatprep.mubr.msk.f32.mxu0 (!%p950_p4), %vm1268_vm1, %v1269_v7  ;;  %v296_v9 = vld [vmem:[#allocation2] sm:$0xff] (!%p950_p4)  ;;  %vm299_vm2 = vcmask (!%p950_p4), 261120   ;;  %v298_v10 = vld [vmem:[%s1412_s23] sm:$0xff] (!%p950_p4)  ;;  %v1270_v14 = vmov (!%p950_p4), 0  }
  0x42   : > { %1055 = vmatprep.subr.bf16.mxu1 (!%p950_p4), %v1267_v4  ;;  %1013 = vmatprep.mubr.msk.f32.mxu1 (!%p950_p4), %vm1268_vm1, %v1269_v7  ;;  %v1444_v8 = vpack.c.bf16 (!%p950_p4), %v295_v6, %v294_v3  ;;  %s1271_s12 = smov (!%p950_p4), 64   ;;  %v297_v16 = vld [vmem:[#allocation3] sm:$0xff] (!%p950_p4)  ;;  %s1272_s13 = smov (!%p950_p4), 32   ;;  %v1467_v20 = vld [vmem:[%s1556_s2] sm:$0xff] (!%p950_p4)  ;;  %v953_v37 = vld [vmem:[%s1412_s23 + $0x8] sm:$0xff] (!%p950_p4) }
  0x43   : > { %1051 = vmatpush3.bf16.msra.mxu0 (!%p950_p4), %v1433_v5  ;;  %1057 = vmatpush3.bf16.msra.mxu1 (!%p950_p4), %v1433_v5  ;;  %vm403_vm3 = vcmp.lt.s32.totalorder (!%p950_p4), %v402_v21, %v1467_v20  ;;  %s1273_s17 = smov (!%p950_p4), 96   ;;  %s516_s21 = sadd.s32 (!%p950_p4), 1, %s1419_s0  ;;  %v956_v60 = vld [vmem:[%s1412_s23 + $0x10] sm:$0xff] (!%p950_p4)  ;;  %v959_v21 = vld [vmem:[%s1412_s23 + $0x18] sm:$0xff] (!%p950_p4) }
  0x44   : > { %1052 = vmatprep.subr.bf16.mxu0 (!%p950_p4), %v1267_v4  ;;  %1058 = vmatprep.subr.bf16.mxu1 (!%p950_p4), %v1267_v4  ;;  %v404_v25 = vsel (!%p950_p4), %vm403_vm3, 1, %v1270_v14  ;;  %v517_v41 = vstv (!%p950_p4), %s516_s21  ;;  %s628_s22 = sadd.s32 (!%p950_p4), 2, %s1419_s0  ;;  %s740_s16 = sadd.s32 (!%p950_p4), 3, %s1419_s0 }
  0x45   : > { %1147 = vset.pattern.permute.xlu1 (!%p950_p4), %v1270_v14  ;;  %1148 = vset.pattern.permute.xlu0 (!%p950_p4), %v1270_v14  ;;  %vm518_vm5 = vcmp.lt.s32.totalorder (!%p950_p4), %v517_v41, %v1467_v20  ;;  %v629_v0 = vstv (!%p950_p4), %s628_s22 }
  0x46   : > { %v519_v43 = vsel (!%p950_p4), %vm518_vm5, 1, %v1270_v14  ;;  %vm630_vm7 = vcmp.lt.s32.totalorder (!%p950_p4), %v629_v0, %v1467_v20 }
  0x47   : > { %1054 = vmatpush3.bf16.msra.mxu0 (!%p950_p4), %v1444_v8  ;;  %1060 = vmatpush3.bf16.msra.mxu1 (!%p950_p4), %v1444_v8  ;;  %v631_v2 = vsel (!%p950_p4), %vm630_vm7, 1, %v1270_v14 }
  0x48   : > { %1061 = vmatprep.subr.bf16.mxu0 %v1267_v4  ;;  %1067 = vmatprep.subr.bf16.mxu1 %v1267_v4 }
  0x4a   : > { %1003 = vmatmul.mubr.msk.f32.vlgmr.msra.gmra.mrb[0].mxu0 %vm299_vm2, %v296_v9 }
  0x4b   : > { %1063 = vmatpush3.bf16.msra.mxu0 %v1433_v5  ;;  %1024 = vmatprep.mubr.msk.f32.mxu0 %vm1268_vm1, %v1269_v7 }
  0x4c   : > { %1064 = vmatprep.subr.bf16.mxu0 %v1267_v4 }
  0x4f   : > { %1066 = vmatpush3.bf16.msra.mxu0 %v1444_v8 }
 0x11d   : > { %v369_v11 = vpop.f32.mrb[0].mxu0 }
 0x11e   : > { %v373_v12 = vadd.f32 %v369_v11, %v298_v10  ;;  %v1004_v13 = vpop.f32.mrb[1].mxu0 }
 0x120   : > { %1149 = vtanh.f32 %v373_v12  ;;  %v952_v17 = vmul.f32 -1.442695, %v373_v12 }
 0x122   : > { %1151 = vpow2.f32 %v952_v17 }
 0x12a   : > { %v1150_v15 = vpop.eup %1149 }
 0x12b   : > { %387 = vrot.lane.b32.xlu0 %v1150_v15, %s1271_s12 }
 0x12c   : > { %v1152_v18 = vpop.eup %1151 }
 0x12d   : > { %v377_v19 = vadd.f32 1.0, %v1152_v18 }
 0x12f   : > { %382 = vrot.lane.b32.xlu0 %v297_v16, %s1272_s13  ;;  %1153 = vrcp.f32 %v377_v19 }
 0x139   : > { %v1154_v22 = vpop.eup %1153 }
 0x19d   : > { %v388_v23 = vpop.permute.xlu0 %387 }
 0x19e   : > { %v390_v24 = vmul.f32 %v1154_v22, %v388_v23 }
 0x1a0   : > { %392 = vrot.lane.b32.xlu1 %v390_v24, %s1272_s13 }
 0x1a1   : > { %v383_v26 = vpop.permute.xlu0 %382 }
 0x1a2   : > { %v385_v27 = vmul.f32 %v1154_v22, %v383_v26 }
 0x1a4   : > { %406 = vperm.xlu1 %1147, %v404_v25   ;;  %v741_v25 = vstv %s740_s16 }
 0x1a5   : > { %vm742_vm9 = vcmp.lt.s32.totalorder %v741_v25, %v1467_v20 }
 0x1a8   : > { %409 = vrot.lane.b32.xlu1 %v296_v9, %s1273_s17 }
 0x212   : > { %v393_v28 = vpop.permute.xlu1 %392 }
 0x213   : > { %v395_v29 = vadd.f32 %v393_v28, %v385_v27  ;;  %v743_v27 = vsel %vm742_vm9, 1, %v1270_v14 }
 0x215   : > { %1155 = vtanh.f32 %v395_v29 }
 0x21f   : > { %v1156_v30 = vpop.eup %1155 }
 0x220   : > { %398 = vrot.lane.b32.xlu0 %v1156_v30, %s1271_s12 }
 0x223   : > { %v407_v31 = vpop.permute.xlu1 %406 }
 0x224   : > { %vm408_vm4 = vcmp.eq.s32.totalorder %v407_v31, 1 }
 0x225   : > { %v413_v50 = vsel %vm408_vm4, %v395_v29, %v383_v26 }
 0x227   : > { %v410_v33 = vpop.permute.xlu1 %409 }
 0x292   : > { %v399_v32 = vpop.permute.xlu0 %398 }
 0x293   : > { %v401_v34 = vmul.f32 %v1154_v22, %v399_v32 }
 0x295   : > { %v412_v35 = vsel %vm408_vm4, %v401_v34, %v410_v33 }
 0x296   : > { %417 = vrot.lane.b32.xlu0 %v412_v35, %s1272_s13 }
 0x308   : > { %v418_v36 = vpop.permute.xlu0 %417 }
 0x309   : > { %1014 = vmatmul.mubr.msk.f32.vlgmr.msra.gmra.mrb[0].mxu1 %vm299_vm2, %v418_v36 }
 0x30a   : > { %1069 = vmatpush3.bf16.msra.mxu1 %v1433_v5  ;;  %1035 = vmatprep.mubr.msk.f32.mxu1 %vm1268_vm1, %v1269_v7 }
 0x30b   : > { %1070 = vmatprep.subr.bf16.mxu1 %v1267_v4 }
 0x30e   : > { %1072 = vmatpush3.bf16.msra.mxu1 %v1444_v8 }
 0x3dc   : > { %v487_v38 = vpop.f32.mrb[0].mxu1 }
 0x3dd   : > { %v491_v39 = vadd.f32 %v953_v37, %v487_v38  ;;  %v1015_v40 = vpop.f32.mrb[1].mxu1 }
 0x3df   : > { %1157 = vtanh.f32 %v491_v39  ;;  %v955_v44 = vmul.f32 -1.442695, %v491_v39 }
 0x3e1   : > { %1159 = vpow2.f32 %v955_v44 }
 0x3e9   : > { %v1158_v42 = vpop.eup %1157 }
 0x3ea   : > { %501 = vrot.lane.b32.xlu1 %v1158_v42, %s1271_s12 }
 0x3eb   : > { %v1160_v45 = vpop.eup %1159 }
 0x3ec   : > { %v495_v46 = vadd.f32 1.0, %v1160_v45 }
 0x3ee   : > { %521 = vperm.xlu1 %1147, %v519_v43   ;;  %1161 = vrcp.f32 %v495_v46 }
 0x3f8   : > { %v1162_v47 = vpop.eup %1161 }
 0x3f9   : > { %v499_v51 = vmul.f32 %v1162_v47, %v413_v50 }
 0x45c   : > { %v502_v48 = vpop.permute.xlu1 %501 }
 0x45d   : > { %v504_v49 = vmul.f32 %v1162_v47, %v502_v48 }
 0x45f   : > { %506 = vrot.lane.b32.xlu0 %v504_v49, %s1272_s13 }
 0x46d   : > { %v522_v55 = vpop.permute.xlu1 %521 }
 0x46e   : > { %vm523_vm6 = vcmp.eq.s32.totalorder %v522_v55, 1 }
 0x4d1   : > { %v507_v52 = vpop.permute.xlu0 %506 }
 0x4d2   : > { %v509_v53 = vadd.f32 %v507_v52, %v499_v51 }
 0x4d4   : > { %1163 = vtanh.f32 %v509_v53  ;;  %v525_v9 = vsel %vm523_vm6, %v509_v53, %v413_v50 }
 0x4de   : > { %v1164_v54 = vpop.eup %1163 }
 0x4df   : > { %512 = vrot.lane.b32.xlu0 %v1164_v54, %s1271_s12 }
 0x551   : > { %v513_v56 = vpop.permute.xlu0 %512 }
 0x552   : > { %v515_v57 = vmul.f32 %v1162_v47, %v513_v56 }
 0x554   : > { %v524_v58 = vsel %vm523_vm6, %v515_v57, %v412_v35 }
 0x555   : > { %529 = vrot.lane.b32.xlu1 %v524_v58, %s1272_s13 }
 0x5c7   : > { %v530_v59 = vpop.permute.xlu1 %529 }
 0x5c8   : > { %1025 = vmatmul.mubr.msk.f32.vlgmr.msra.gmra.mrb[2].mxu0 %vm299_vm2, %v530_v59 }
 0x69b   : > { %v599_v61 = vpop.f32.mrb[2].mxu0 }
 0x69c   : > { %v603_v62 = vadd.f32 %v956_v60, %v599_v61  ;;  %v1026_v63 = vpop.f32.mrb[3].mxu0 }
 0x69e   : > { %1165 = vtanh.f32 %v603_v62  ;;  %v958_v3 = vmul.f32 -1.442695, %v603_v62 }
 0x6a0   : > { %1167 = vpow2.f32 %v958_v3 }
 0x6a8   : > { %v1166_v1 = vpop.eup %1165 }
 0x6a9   : > { %613 = vrot.lane.b32.xlu0 %v1166_v1, %s1271_s12 }
 0x6aa   : > { %v1168_v4 = vpop.eup %1167 }
 0x6ab   : > { %v607_v5 = vadd.f32 1.0, %v1168_v4 }
 0x6ad   : > { %633 = vperm.xlu0 %1148, %v631_v2   ;;  %1169 = vrcp.f32 %v607_v5 }
 0x6b7   : > { %v1170_v6 = vpop.eup %1169 }
 0x6b8   : > { %v611_v10 = vmul.f32 %v1170_v6, %v525_v9 }
 0x71b   : > { %v614_v7 = vpop.permute.xlu0 %613 }
 0x71c   : > { %v616_v8 = vmul.f32 %v1170_v6, %v614_v7 }
 0x71e   : > { %618 = vrot.lane.b32.xlu1 %v616_v8, %s1272_s13 }
 0x72c   : > { %v634_v15 = vpop.permute.xlu0 %633 }
 0x72d   : > { %vm635_vm8 = vcmp.eq.s32.totalorder %v634_v15, 1 }
 0x790   : > { %v619_v11 = vpop.permute.xlu1 %618 }
 0x791   : > { %v621_v12 = vadd.f32 %v619_v11, %v611_v10 }
 0x793   : > { %1171 = vtanh.f32 %v621_v12  ;;  %v637_v34 = vsel %vm635_vm8, %v621_v12, %v525_v9 }
 0x79d   : > { %v1172_v13 = vpop.eup %1171 }
 0x79e   : > { %624 = vrot.lane.b32.xlu1 %v1172_v13, %s1271_s12 }
 0x810   : > { %v625_v16 = vpop.permute.xlu1 %624 }
 0x811   : > { %v627_v17 = vmul.f32 %v1170_v6, %v625_v16 }
 0x813   : > { %v636_v18 = vsel %vm635_vm8, %v627_v17, %v524_v58 }
 0x814   : > { %641 = vrot.lane.b32.xlu1 %v636_v18, %s1272_s13 }
 0x886   : > { %v642_v19 = vpop.permute.xlu1 %641 }
 0x887   : > { %1036 = vmatmul.mubr.msk.f32.vlgmr.msra.gmra.mrb[2].mxu1 %vm299_vm2, %v642_v19 }
 0x95a   : > { %v711_v22 = vpop.f32.mrb[2].mxu1 }
 0x95b   : > { %v715_v23 = vadd.f32 %v959_v21, %v711_v22  ;;  %v1037_v24 = vpop.f32.mrb[3].mxu1 }
 0x95d   : > { %1173 = vtanh.f32 %v715_v23  ;;  %v961_v28 = vmul.f32 -1.442695, %v715_v23 }
 0x95f   : > { %1175 = vpow2.f32 %v961_v28 }
 0x967   : > { %v1174_v26 = vpop.eup %1173 }
 0x968   : > { %725 = vrot.lane.b32.xlu0 %v1174_v26, %s1271_s12 }
 0x969   : > { %v1176_v29 = vpop.eup %1175 }
 0x96a   : > { %v719_v30 = vadd.f32 1.0, %v1176_v29 }
 0x96c   : > { %745 = vperm.xlu0 %1148, %v743_v27   ;;  %1177 = vrcp.f32 %v719_v30 }
 0x976   : > { %v1178_v31 = vpop.eup %1177 }
 0x977   : > { %v723_v35 = vmul.f32 %v1178_v31, %v637_v34 }
 0x9da   : > { %v726_v32 = vpop.permute.xlu0 %725 }
 0x9db   : > { %v728_v33 = vmul.f32 %v1178_v31, %v726_v32 }
 0x9dd   : > { %730 = vrot.lane.b32.xlu1 %v728_v33, %s1272_s13 }
 0x9eb   : > { %v746_v38 = vpop.permute.xlu0 %745 }
 0x9ec   : > { %vm747_vm10 = vcmp.eq.s32.totalorder %v746_v38, 1 }
 0xa4f   : > { %v731_v20 = vpop.permute.xlu1 %730 }
 0xa50   : > { %v733_v36 = vadd.f32 %v731_v20, %v723_v35 }
 0xa52   : > { %1179 = vtanh.f32 %v733_v36  ;;  %v749_v14 = vsel %vm747_vm10, %v733_v36, %v637_v34 }
 0xa5c   : > { %v1180_v37 = vpop.eup %1179 }
 0xa5d   : > { %736 = vrot.lane.b32.xlu1 %v1180_v37, %s1271_s12 }
 0xa61   : > { %756 = vrot.lane.b32.xlu1 %v749_v14, %s1273_s17 }
 0xacf   : > { %v737_v39 = vpop.permute.xlu1 %736 }
 0xad0   : > { %v739_v40 = vmul.f32 %v1178_v31, %v737_v39 }
 0xad2   : > { %v748_v41 = vsel %vm747_vm10, %v739_v40, %v636_v18 }
 0xad3   : > { %751 = vrot.lane.b32.xlu0 %v748_v41, %s1272_s13  ;;  %v757_v42 = vpop.permute.xlu1 %756 }
 0xad4   : > { %759 = vst.msk [vmem:[#allocation3] sm:$0xff] %vm299_vm2, %v757_v42 }
 0xb45   : > { %v752_v43 = vpop.permute.xlu0 %751 }
 0xb46   : > { %754 = vst.msk [vmem:[#allocation2] sm:$0xff] %vm299_vm2, %v752_v43 }
 0xb47 PF: > { %p962_p7 = scmp.ne.s32.totalorder %s1253_s26, 1 }
 0xb48   : > { %v765_v44 = vld [vmem:[%s1558_s4] sm:$0xff] (!%p962_p7)  ;;  %v766_v45 = vld [vmem:[%s1558_s4 + $0x8] sm:$0xff] (!%p962_p7)  ;;  %v767_v46 = vld [vmem:[%s1558_s4 + $0x10] sm:$0xff] (!%p962_p7)  ;;  %v1274_v47 = vmov (!%p962_p7), 0.0|0.0   ;;  %vm1275_vm11 = vmmov (!%p962_p7), 0   ;;  %v1276_v50 = vmov (!%p962_p7), 0.0  }
 0xb49   : > { %763 = sbr.rel (%p962_p7) target bundleno = 3113 (0xc29), region = 56  ;;  %1073 = vmatprep.subr.bf16.mxu0 (!%p962_p7), %v1274_v47  ;;  %v1074_v48 = vpack.c.bf16 (!%p962_p7), %v766_v45, %v765_v44  ;;  %v768_v49 = vld [vmem:[%s1558_s4 + $0x18] sm:$0xff] (!%p962_p7)  ;;  %1046 = vmatprep.mubr.msk.f32.mxu0 (!%p962_p7), %vm1275_vm11, %v1276_v50  ;;  %vm776_vm12 = vcmask (!%p962_p7), 261120   ;;  %v963_v53 = vld [vmem:[%s1559_s5] ss:$0 sm:$0xff] (!%p962_p7)  ;;  %vm850_vm13 = vcmask (!%p962_p7), 15360  }
 0xb4a   : > { %v1077_v51 = vpack.c.bf16 (!%p962_p7), %v768_v49, %v767_v46 }
 0xb4b   : > { %1075 = vmatpush3.bf16.msra.mxu0 (!%p962_p7), %v1074_v48 }
 0xb4c   : > { %1076 = vmatprep.subr.bf16.mxu0 (!%p962_p7), %v1274_v47 }
 0xb4d   : > { %v764_v52 = vld [vmem:[#allocation2] sm:$0xff] (!%p962_p7) }
 0xb4f   : > { %1078 = vmatpush3.bf16.msra.mxu0 (!%p962_p7), %v1077_v51 }
 0xb52   : > { %1047 = vmatmul.mubr.msk.f32.vlgmr.msra.gmra.mrb[0].mxu0 %vm776_vm12, %v764_v52 }
 0xc25   : > { %v846_v54 = vpop.f32.mrb[0].mxu0 }
 0xc26   : > { %v847_v55 = vadd.f32 %v963_v53, %v846_v54  ;;  %v1048_v56 = vpop.f32.mrb[1].mxu0 }
 0xc28   : > { %851 = vst.msk [vmem:[%s1560_s6] sm:$0xff] %vm850_vm13, %v847_v55 }
 0xc29 PF: > { %s20_s28 = sadd.s32 1, %s1261_s28   ;;  %s1564_s23 = smov %s1245_s24 }
 0xc2a   : > { %p17_p5 = scmp.ge.s32.totalorder %s20_s28, 4   ;;  %s1565_s24 = smov %s1249_s25 }
 0xc2b   : > { %s1566_s25 = smov %s1364_s10  ;;  %s1567_s26 = smov %s1257_s27 }
 0xc2c   : > { %s1568_s27 = smov %s1570_s29  ;;  %19 = sbr.rel (!%p17_p5) target bundleno = 6 (0x6), region = 98 }
 0xc33   :  { %871 = vsyncpa [#allocation7], 1 }
 0xc34   :  { %873 = vsyncpa [#allocation7 + $0x1], 1 }

</bundles_post_ra>
